<compile_context>
chip_gen: v7x
topology: tpu7x:2x2x1
jax: 0.10.0
libtpu: 0.0.40
codegen_flags: <defaults>
</compile_context>

<pallas_src>
import jax
import jax.numpy as jnp
from jax.experimental import pallas as pl
from jax.experimental.pallas import tpu as pltpu

EPS = 1e-5


def downconv_kernel(xc_ref, w_ref, gamma_ref, beta_ref, o_ref, pp_ref, stats_ref):
    # xc_ref    : (4, 1, Hh, Wh, Cin)  -- 4 de-interleaved 2x2 pool candidates, one image
    # w_ref     : (9, Cin, Cout)       -- 3x3 taps, tap t = (dy, dx) = (t // 3, t % 3)
    # gamma_ref : (1, Cout)            -- BN affine weight
    # beta_ref  : (1, Cout)            -- BN affine bias
    # o_ref     : (N, Hh*Wh, Cout)     -- full output slab, resident across the grid
    # pp_ref    : VMEM (Hh+2, Wh+2, Cin) -- zero-padded pooled activations (halo zeroed once)
    # stats_ref : VMEM (2, 1, Cout)    -- running [sum, sum_of_squares] per channel
    n = pl.program_id(0)
    num_n = pl.num_programs(0)
    _, _, Hh, Wh, Cin = xc_ref.shape
    N, P, Cout = o_ref.shape                       # P = Hh * Wh

    # --- one-time init: zero padded scratch (halo is never touched again) + BN stats ---
    @pl.when(n == 0)
    def _init():
        pp_ref[...] = jnp.zeros(pp_ref.shape, pp_ref.dtype)
        stats_ref[...] = jnp.zeros(stats_ref.shape, stats_ref.dtype)

    # --- MaxPool2d(kernel_size=2): elementwise max over the 4 candidates (VPU) ---------
    pooled = jnp.maximum(jnp.maximum(xc_ref[0, 0], xc_ref[1, 0]),
                         jnp.maximum(xc_ref[2, 0], xc_ref[3, 0]))      # (Hh, Wh, Cin)

    # interior-only write; the 1-pixel halo was zeroed at step 0 and is never overwritten
    pp_ref[1:1 + Hh, 1:1 + Wh, :] = pooled

    # --- Conv2d 3x3 pad=1: 9 accumulating 2-D MXU matmuls (P, Cin) x (Cin, Cout) -------
    # The reshape only relabels sublane tiles (lane dim Cin untouched; cheapest when
    # Wh % 8 == 0, which holds for the shapes used here).
    acc = jnp.zeros((P, Cout), jnp.float32)
    for t in range(9):
        dy, dx = t // 3, t % 3
        patch = pp_ref[dy:dy + Hh, dx:dx + Wh, :].reshape(P, Cin)
        acc = acc + jnp.dot(patch, w_ref[t], preferred_element_type=jnp.float32)
    # Conv2d bias intentionally omitted: it is exactly cancelled by the train-mode BN
    # mean subtraction below (output is bit-for-bit the same semantics).

    # --- BN statistics, single pass: per-channel sum and sum-of-squares ----------------
    stats_ref[0] = stats_ref[0] + jnp.sum(acc, axis=0, keepdims=True)
    stats_ref[1] = stats_ref[1] + jnp.sum(acc * acc, axis=0, keepdims=True)

    # conv result for this image stays resident in the (revisited) output block
    o_ref[n] = acc

    # --- last image: finalize BN (folded scale/shift) + ReLU over the whole output -----
    @pl.when(n == num_n - 1)
    def _finalize():
        inv_cnt = 1.0 / float(N * P)
        mean = stats_ref[0] * inv_cnt                           # (1, Cout)
        var = stats_ref[1] * inv_cnt - mean * mean              # biased variance
        scale = gamma_ref[...] * jax.lax.rsqrt(var + EPS)       # (1, Cout)  (EUP rsqrt)
        shift = beta_ref[...] - mean * scale
        y = o_ref[...] * scale.reshape(1, 1, Cout) + shift.reshape(1, 1, Cout)
        o_ref[...] = jnp.maximum(y, 0.0)


def down_conv(x_nchw, w_oihw, b, gamma, beta):
    """DownConv forward.  x_nchw: (N, Cin, H, W); returns (N, Cout, H//2, W//2)."""
    N, Cin, H, W = x_nchw.shape
    Cout = w_oihw.shape[0]
    Hh, Wh = H // 2, W // 2
    P = Hh * Wh

    # Layout glue: crop to even H/W (PyTorch MaxPool2d(2) floors), then one fused
    # transpose NCHW -> (4, N, Hh, Wh, Cin) with the four 2x2 pooling candidates on the
    # leading axis.  The surrounding reshapes are free views, so this is a single HBM
    # copy (same cost as a plain NHWC transpose) instead of transpose + slice + stack.
    x = x_nchw[:, :, :2 * Hh, :2 * Wh].astype(jnp.float32)
    xc = (x.reshape(N, Cin, Hh, 2, Wh, 2)
            .transpose(3, 5, 0, 2, 4, 1)
            .reshape(4, N, Hh, Wh, Cin))

    w_taps = jnp.transpose(w_oihw, (2, 3, 1, 0)).reshape(9, Cin, Cout).astype(jnp.float32)
    g2 = gamma.reshape(1, Cout).astype(jnp.float32)
    be2 = beta.reshape(1, Cout).astype(jnp.float32)
    # `b` (conv bias) is not passed to the kernel: train-mode BN cancels it exactly.
    del b

    out = pl.pallas_call(
        downconv_kernel,
        out_shape=jax.ShapeDtypeStruct((N, P, Cout), jnp.float32),
        grid=(N,),
        in_specs=[
            pl.BlockSpec((4, 1, Hh, Wh, Cin), lambda n: (0, n, 0, 0, 0)),  # streamed/pipelined
            pl.BlockSpec((9, Cin, Cout), lambda n: (0, 0, 0)),
            pl.BlockSpec((1, Cout), lambda n: (0, 0)),
            pl.BlockSpec((1, Cout), lambda n: (0, 0)),
        ],
        out_specs=pl.BlockSpec((N, P, Cout), lambda n: (0, 0, 0)),          # resident block
        scratch_shapes=[
            pltpu.VMEM((Hh + 2, Wh + 2, Cin), jnp.float32),   # padded pooled activations
            pltpu.VMEM((2, 1, Cout), jnp.float32),            # BN sum / sum-of-squares
        ],
        # "arbitrary": sequential batch axis (cross-batch BN stats + resident output).
        compiler_params=pltpu.CompilerParams(dimension_semantics=("arbitrary",)),
    )(xc, w_taps, g2, be2)

    # free view + single output transpose back to PyTorch NCHW
    return jnp.transpose(out.reshape(N, Hh, Wh, Cout), (0, 3, 1, 2))


def down_conv_reference(x, w, b, gamma, beta):
    """Pure-JAX reference matching the PyTorch module (train-mode BN, conv bias kept)."""
    N, C, H, W = x.shape
    p = x[:, :, :2 * (H // 2), :2 * (W // 2)]
    p = p.reshape(N, C, H // 2, 2, W // 2, 2).max(axis=(3, 5))
    y = jax.lax.conv_general_dilated(p, w, (1, 1), ((1, 1), (1, 1)),
                                     dimension_numbers=('NCHW', 'OIHW', 'NCHW'))
    y = y + b.reshape(1, -1, 1, 1)
    mean = y.mean(axis=(0, 2, 3), keepdims=True)
    var = jnp.mean((y - mean) ** 2, axis=(0, 2, 3), keepdims=True)
    y = (y - mean) * jax.lax.rsqrt(var + EPS)
    y = y * gamma.reshape(1, -1, 1, 1) + beta.reshape(1, -1, 1, 1)
    return jnp.maximum(y, 0.0)


if __name__ == "__main__":
    key = jax.random.PRNGKey(0)
    k1, k2, k3, k4, k5 = jax.random.split(key, 5)

    N, Cin, Cout, H, W = 2, 4, 8, 16, 16
    x = jax.random.normal(k1, (N, Cin, H, W), jnp.float32)
    w = jax.random.normal(k2, (Cout, Cin, 3, 3), jnp.float32) * 0.2   # nn.Conv2d weight
    b = jax.random.normal(k3, (Cout,), jnp.float32) * 0.1             # nn.Conv2d bias
    gamma = 1.0 + 0.1 * jax.random.normal(k4, (Cout,), jnp.float32)   # BN weight
    beta = 0.05 * jax.random.normal(k5, (Cout,), jnp.float32)         # BN bias

    out = jax.block_until_ready(down_conv(x, w, b, gamma, beta))
    ref = jax.block_until_ready(down_conv_reference(x, w, b, gamma, beta))

    assert out.shape == (N, Cout, H // 2, W // 2), out.shape
    assert jnp.allclose(out, ref, atol=5e-2, rtol=5e-2), float(jnp.max(jnp.abs(out - ref)))
    print("KERNEL_OK")
</pallas_src>

<mosaic_0001>
module attributes {stable_mosaic.version = 11 : i64} {
  func.func @downconv_kernel(%arg0: i32, %arg1: memref<4x1x8x8x4xf32, #tpu.memory_space<vmem>>, %arg2: memref<9x4x8xf32, #tpu.memory_space<vmem>>, %arg3: memref<1x8xf32, #tpu.memory_space<vmem>>, %arg4: memref<1x8xf32, #tpu.memory_space<vmem>>, %arg5: memref<2x64x8xf32, #tpu.memory_space<vmem>>, %arg6: memref<10x10x4xf32, #tpu.memory_space<vmem>>, %arg7: memref<2x1x8xf32, #tpu.memory_space<vmem>>) attributes {dimension_semantics = [#tpu.dimension_semantics<arbitrary>], iteration_bounds = array<i64: 2>, scalar_prefetch = 0 : i64, scratch_operands = 2 : i64, tpu.core_type = #tpu.core_type<tc>, window_params = [{transform_indices = @transform_0, window_bounds = array<i64: 4, 1, 8, 8, 4>}, {pipeline_mode = #tpu.pipeline_mode<synchronous>, transform_indices = @transform_1, window_bounds = array<i64: 9, 4, 8>}, {pipeline_mode = #tpu.pipeline_mode<synchronous>, transform_indices = @transform_2, window_bounds = array<i64: 1, 8>}, {pipeline_mode = #tpu.pipeline_mode<synchronous>, transform_indices = @transform_3, window_bounds = array<i64: 1, 8>}, {pipeline_mode = #tpu.pipeline_mode<synchronous>, transform_indices = @transform_4, window_bounds = array<i64: 2, 64, 8>}]} {
    %c0_i32 = arith.constant 0 : i32
    %0 = arith.cmpi eq, %arg0, %c0_i32 : i32
    %1 = arith.extui %0 : i1 to i32
    %c0_i32_0 = arith.constant 0 : i32
    %2 = arith.cmpi ne, %1, %c0_i32_0 : i32
    scf.if %2 {
      %cst_95 = arith.constant 0.000000e+00 : f32
      %94 = vector.broadcast %cst_95 : f32 to vector<10x10x4xf32>
      %c0_96 = arith.constant 0 : index
      %c0_97 = arith.constant 0 : index
      %c0_98 = arith.constant 0 : index
      %95 = vector.load %arg6[%c0_96, %c0_97, %c0_98] : memref<10x10x4xf32, #tpu.memory_space<vmem>>, vector<10x10x4xf32>
      tpu.vector_store %arg6[%c0_96, %c0_97, %c0_98], %94 {strides = array<i32>} : memref<10x10x4xf32, #tpu.memory_space<vmem>>, vector<10x10x4xf32>,
      %cst_99 = arith.constant 0.000000e+00 : f32
      %96 = vector.broadcast %cst_99 : f32 to vector<2x1x8xf32>
      %c0_100 = arith.constant 0 : index
      %c0_101 = arith.constant 0 : index
      %c0_102 = arith.constant 0 : index
      %97 = vector.load %arg7[%c0_100, %c0_101, %c0_102] : memref<2x1x8xf32, #tpu.memory_space<vmem>>, vector<2x1x8xf32>
      tpu.vector_store %arg7[%c0_100, %c0_101, %c0_102], %96 {strides = array<i32>} : memref<2x1x8xf32, #tpu.memory_space<vmem>>, vector<2x1x8xf32>,
    } else {
    }
    %c0 = arith.constant 0 : index
    %c0_1 = arith.constant 0 : index
    %c0_2 = arith.constant 0 : index
    %c0_3 = arith.constant 0 : index
    %c0_4 = arith.constant 0 : index
    %3 = vector.load %arg1[%c0, %c0_1, %c0_2, %c0_3, %c0_4] : memref<4x1x8x8x4xf32, #tpu.memory_space<vmem>>, vector<1x1x8x8x4xf32>
    %4 = vector.shape_cast %3 : vector<1x1x8x8x4xf32> to vector<8x8x4xf32>
    %c1 = arith.constant 1 : index
    %c0_5 = arith.constant 0 : index
    %c0_6 = arith.constant 0 : index
    %c0_7 = arith.constant 0 : index
    %c0_8 = arith.constant 0 : index
    %5 = vector.load %arg1[%c1, %c0_5, %c0_6, %c0_7, %c0_8] : memref<4x1x8x8x4xf32, #tpu.memory_space<vmem>>, vector<1x1x8x8x4xf32>
    %6 = vector.shape_cast %5 : vector<1x1x8x8x4xf32> to vector<8x8x4xf32>
    %7 = arith.maximumf %4, %6 : vector<8x8x4xf32>
    %c2 = arith.constant 2 : index
    %c0_9 = arith.constant 0 : index
    %c0_10 = arith.constant 0 : index
    %c0_11 = arith.constant 0 : index
    %c0_12 = arith.constant 0 : index
    %8 = vector.load %arg1[%c2, %c0_9, %c0_10, %c0_11, %c0_12] : memref<4x1x8x8x4xf32, #tpu.memory_space<vmem>>, vector<1x1x8x8x4xf32>
    %9 = vector.shape_cast %8 : vector<1x1x8x8x4xf32> to vector<8x8x4xf32>
    %c3 = arith.constant 3 : index
    %c0_13 = arith.constant 0 : index
    %c0_14 = arith.constant 0 : index
    %c0_15 = arith.constant 0 : index
    %c0_16 = arith.constant 0 : index
    %10 = vector.load %arg1[%c3, %c0_13, %c0_14, %c0_15, %c0_16] : memref<4x1x8x8x4xf32, #tpu.memory_space<vmem>>, vector<1x1x8x8x4xf32>
    %11 = vector.shape_cast %10 : vector<1x1x8x8x4xf32> to vector<8x8x4xf32>
    %12 = arith.maximumf %9, %11 : vector<8x8x4xf32>
    %13 = arith.maximumf %7, %12 : vector<8x8x4xf32>
    %c1_17 = arith.constant 1 : index
    %c1_18 = arith.constant 1 : index
    %c0_19 = arith.constant 0 : index
    %14 = vector.load %arg6[%c1_17, %c1_18, %c0_19] : memref<10x10x4xf32, #tpu.memory_space<vmem>>, vector<8x8x4xf32>
    tpu.vector_store %arg6[%c1_17, %c1_18, %c0_19], %13 {strides = array<i32>} : memref<10x10x4xf32, #tpu.memory_space<vmem>>, vector<8x8x4xf32>,
    %cst = arith.constant 0.000000e+00 : f32
    %15 = vector.broadcast %cst : f32 to vector<64x8xf32>
    %c0_20 = arith.constant 0 : index
    %c0_21 = arith.constant 0 : index
    %c0_22 = arith.constant 0 : index
    %16 = vector.load %arg6[%c0_20, %c0_21, %c0_22] : memref<10x10x4xf32, #tpu.memory_space<vmem>>, vector<8x8x4xf32>
    %17 = vector.shape_cast %16 : vector<8x8x4xf32> to vector<64x4xf32>
    %c0_23 = arith.constant 0 : index
    %c0_24 = arith.constant 0 : index
    %c0_25 = arith.constant 0 : index
    %18 = vector.load %arg2[%c0_23, %c0_24, %c0_25] : memref<9x4x8xf32, #tpu.memory_space<vmem>>, vector<1x4x8xf32>
    %19 = vector.shape_cast %18 : vector<1x4x8xf32> to vector<4x8xf32>
    %cst_26 = arith.constant dense<0.000000e+00> : vector<64x8xf32>
    %20 = tpu.matmul %17, %19, %cst_26 {dimension_numbers = #tpu.dot_dimension_numbers<[1], [0], [0], [1], [0, 0, 1, 1], [], []>} : vector<64x4xf32>, vector<4x8xf32>, vector<64x8xf32> -> vector<64x8xf32>
    %21 = arith.addf %15, %20 : vector<64x8xf32>
    %c0_27 = arith.constant 0 : index
    %c1_28 = arith.constant 1 : index
    %c0_29 = arith.constant 0 : index
    %22 = vector.load %arg6[%c0_27, %c1_28, %c0_29] : memref<10x10x4xf32, #tpu.memory_space<vmem>>, vector<8x8x4xf32>
    %23 = vector.shape_cast %22 : vector<8x8x4xf32> to vector<64x4xf32>
    %c1_30 = arith.constant 1 : index
    %c0_31 = arith.constant 0 : index
    %c0_32 = arith.constant 0 : index
    %24 = vector.load %arg2[%c1_30, %c0_31, %c0_32] : memref<9x4x8xf32, #tpu.memory_space<vmem>>, vector<1x4x8xf32>
    %25 = vector.shape_cast %24 : vector<1x4x8xf32> to vector<4x8xf32>
    %cst_33 = arith.constant dense<0.000000e+00> : vector<64x8xf32>
    %26 = tpu.matmul %23, %25, %cst_33 {dimension_numbers = #tpu.dot_dimension_numbers<[1], [0], [0], [1], [0, 0, 1, 1], [], []>} : vector<64x4xf32>, vector<4x8xf32>, vector<64x8xf32> -> vector<64x8xf32>
    %27 = arith.addf %21, %26 : vector<64x8xf32>
    %c0_34 = arith.constant 0 : index
    %c2_35 = arith.constant 2 : index
    %c0_36 = arith.constant 0 : index
    %28 = vector.load %arg6[%c0_34, %c2_35, %c0_36] : memref<10x10x4xf32, #tpu.memory_space<vmem>>, vector<8x8x4xf32>
    %29 = vector.shape_cast %28 : vector<8x8x4xf32> to vector<64x4xf32>
    %c2_37 = arith.constant 2 : index
    %c0_38 = arith.constant 0 : index
    %c0_39 = arith.constant 0 : index
    %30 = vector.load %arg2[%c2_37, %c0_38, %c0_39] : memref<9x4x8xf32, #tpu.memory_space<vmem>>, vector<1x4x8xf32>
    %31 = vector.shape_cast %30 : vector<1x4x8xf32> to vector<4x8xf32>
    %cst_40 = arith.constant dense<0.000000e+00> : vector<64x8xf32>
    %32 = tpu.matmul %29, %31, %cst_40 {dimension_numbers = #tpu.dot_dimension_numbers<[1], [0], [0], [1], [0, 0, 1, 1], [], []>} : vector<64x4xf32>, vector<4x8xf32>, vector<64x8xf32> -> vector<64x8xf32>
    %33 = arith.addf %27, %32 : vector<64x8xf32>
    %c1_41 = arith.constant 1 : index
    %c0_42 = arith.constant 0 : index
    %c0_43 = arith.constant 0 : index
    %34 = vector.load %arg6[%c1_41, %c0_42, %c0_43] : memref<10x10x4xf32, #tpu.memory_space<vmem>>, vector<8x8x4xf32>
    %35 = vector.shape_cast %34 : vector<8x8x4xf32> to vector<64x4xf32>
    %c3_44 = arith.constant 3 : index
    %c0_45 = arith.constant 0 : index
    %c0_46 = arith.constant 0 : index
    %36 = vector.load %arg2[%c3_44, %c0_45, %c0_46] : memref<9x4x8xf32, #tpu.memory_space<vmem>>, vector<1x4x8xf32>
    %37 = vector.shape_cast %36 : vector<1x4x8xf32> to vector<4x8xf32>
    %cst_47 = arith.constant dense<0.000000e+00> : vector<64x8xf32>
    %38 = tpu.matmul %35, %37, %cst_47 {dimension_numbers = #tpu.dot_dimension_numbers<[1], [0], [0], [1], [0, 0, 1, 1], [], []>} : vector<64x4xf32>, vector<4x8xf32>, vector<64x8xf32> -> vector<64x8xf32>
    %39 = arith.addf %33, %38 : vector<64x8xf32>
    %c1_48 = arith.constant 1 : index
    %c1_49 = arith.constant 1 : index
    %c0_50 = arith.constant 0 : index
    %40 = vector.load %arg6[%c1_48, %c1_49, %c0_50] : memref<10x10x4xf32, #tpu.memory_space<vmem>>, vector<8x8x4xf32>
    %41 = vector.shape_cast %40 : vector<8x8x4xf32> to vector<64x4xf32>
    %c4 = arith.constant 4 : index
    %c0_51 = arith.constant 0 : index
    %c0_52 = arith.constant 0 : index
    %42 = vector.load %arg2[%c4, %c0_51, %c0_52] : memref<9x4x8xf32, #tpu.memory_space<vmem>>, vector<1x4x8xf32>
    %43 = vector.shape_cast %42 : vector<1x4x8xf32> to vector<4x8xf32>
    %cst_53 = arith.constant dense<0.000000e+00> : vector<64x8xf32>
    %44 = tpu.matmul %41, %43, %cst_53 {dimension_numbers = #tpu.dot_dimension_numbers<[1], [0], [0], [1], [0, 0, 1, 1], [], []>} : vector<64x4xf32>, vector<4x8xf32>, vector<64x8xf32> -> vector<64x8xf32>
    %45 = arith.addf %39, %44 : vector<64x8xf32>
    %c1_54 = arith.constant 1 : index
    %c2_55 = arith.constant 2 : index
    %c0_56 = arith.constant 0 : index
    %46 = vector.load %arg6[%c1_54, %c2_55, %c0_56] : memref<10x10x4xf32, #tpu.memory_space<vmem>>, vector<8x8x4xf32>
    %47 = vector.shape_cast %46 : vector<8x8x4xf32> to vector<64x4xf32>
    %c5 = arith.constant 5 : index
    %c0_57 = arith.constant 0 : index
    %c0_58 = arith.constant 0 : index
    %48 = vector.load %arg2[%c5, %c0_57, %c0_58] : memref<9x4x8xf32, #tpu.memory_space<vmem>>, vector<1x4x8xf32>
    %49 = vector.shape_cast %48 : vector<1x4x8xf32> to vector<4x8xf32>
    %cst_59 = arith.constant dense<0.000000e+00> : vector<64x8xf32>
    %50 = tpu.matmul %47, %49, %cst_59 {dimension_numbers = #tpu.dot_dimension_numbers<[1], [0], [0], [1], [0, 0, 1, 1], [], []>} : vector<64x4xf32>, vector<4x8xf32>, vector<64x8xf32> -> vector<64x8xf32>
    %51 = arith.addf %45, %50 : vector<64x8xf32>
    %c2_60 = arith.constant 2 : index
    %c0_61 = arith.constant 0 : index
    %c0_62 = arith.constant 0 : index
    %52 = vector.load %arg6[%c2_60, %c0_61, %c0_62] : memref<10x10x4xf32, #tpu.memory_space<vmem>>, vector<8x8x4xf32>
    %53 = vector.shape_cast %52 : vector<8x8x4xf32> to vector<64x4xf32>
    %c6 = arith.constant 6 : index
    %c0_63 = arith.constant 0 : index
    %c0_64 = arith.constant 0 : index
    %54 = vector.load %arg2[%c6, %c0_63, %c0_64] : memref<9x4x8xf32, #tpu.memory_space<vmem>>, vector<1x4x8xf32>
    %55 = vector.shape_cast %54 : vector<1x4x8xf32> to vector<4x8xf32>
    %cst_65 = arith.constant dense<0.000000e+00> : vector<64x8xf32>
    %56 = tpu.matmul %53, %55, %cst_65 {dimension_numbers = #tpu.dot_dimension_numbers<[1], [0], [0], [1], [0, 0, 1, 1], [], []>} : vector<64x4xf32>, vector<4x8xf32>, vector<64x8xf32> -> vector<64x8xf32>
    %57 = arith.addf %51, %56 : vector<64x8xf32>
    %c2_66 = arith.constant 2 : index
    %c1_67 = arith.constant 1 : index
    %c0_68 = arith.constant 0 : index
    %58 = vector.load %arg6[%c2_66, %c1_67, %c0_68] : memref<10x10x4xf32, #tpu.memory_space<vmem>>, vector<8x8x4xf32>
    %59 = vector.shape_cast %58 : vector<8x8x4xf32> to vector<64x4xf32>
    %c7 = arith.constant 7 : index
    %c0_69 = arith.constant 0 : index
    %c0_70 = arith.constant 0 : index
    %60 = vector.load %arg2[%c7, %c0_69, %c0_70] : memref<9x4x8xf32, #tpu.memory_space<vmem>>, vector<1x4x8xf32>
    %61 = vector.shape_cast %60 : vector<1x4x8xf32> to vector<4x8xf32>
    %cst_71 = arith.constant dense<0.000000e+00> : vector<64x8xf32>
    %62 = tpu.matmul %59, %61, %cst_71 {dimension_numbers = #tpu.dot_dimension_numbers<[1], [0], [0], [1], [0, 0, 1, 1], [], []>} : vector<64x4xf32>, vector<4x8xf32>, vector<64x8xf32> -> vector<64x8xf32>
    %63 = arith.addf %57, %62 : vector<64x8xf32>
    %c2_72 = arith.constant 2 : index
    %c2_73 = arith.constant 2 : index
    %c0_74 = arith.constant 0 : index
    %64 = vector.load %arg6[%c2_72, %c2_73, %c0_74] : memref<10x10x4xf32, #tpu.memory_space<vmem>>, vector<8x8x4xf32>
    %65 = vector.shape_cast %64 : vector<8x8x4xf32> to vector<64x4xf32>
    %c8 = arith.constant 8 : index
    %c0_75 = arith.constant 0 : index
    %c0_76 = arith.constant 0 : index
    %66 = vector.load %arg2[%c8, %c0_75, %c0_76] : memref<9x4x8xf32, #tpu.memory_space<vmem>>, vector<1x4x8xf32>
    %67 = vector.shape_cast %66 : vector<1x4x8xf32> to vector<4x8xf32>
    %cst_77 = arith.constant dense<0.000000e+00> : vector<64x8xf32>
    %68 = tpu.matmul %65, %67, %cst_77 {dimension_numbers = #tpu.dot_dimension_numbers<[1], [0], [0], [1], [0, 0, 1, 1], [], []>} : vector<64x4xf32>, vector<4x8xf32>, vector<64x8xf32> -> vector<64x8xf32>
    %69 = arith.addf %63, %68 : vector<64x8xf32>
    %c0_78 = arith.constant 0 : index
    %c0_79 = arith.constant 0 : index
    %c0_80 = arith.constant 0 : index
    %70 = vector.load %arg7[%c0_78, %c0_79, %c0_80] : memref<2x1x8xf32, #tpu.memory_space<vmem>>, vector<1x1x8xf32>
    %71 = vector.shape_cast %70 : vector<1x1x8xf32> to vector<1x8xf32>
    %cst_81 = arith.constant dense<0.000000e+00> : vector<8xf32>
    %72 = vector.multi_reduction <add>, %69, %cst_81 [0] : vector<64x8xf32> to vector<8xf32>
    %73 = vector.shape_cast %72 : vector<8xf32> to vector<1x8xf32>
    %74 = arith.addf %71, %73 : vector<1x8xf32>
    %c0_82 = arith.constant 0 : index
    %c0_83 = arith.constant 0 : index
    %c0_84 = arith.constant 0 : index
    %75 = vector.load %arg7[%c0_82, %c0_83, %c0_84] : memref<2x1x8xf32, #tpu.memory_space<vmem>>, vector<1x1x8xf32>
    %76 = vector.shape_cast %75 : vector<1x1x8xf32> to vector<1x8xf32>
    %77 = vector.shape_cast %74 : vector<1x8xf32> to vector<1x1x8xf32>
    tpu.vector_store %arg7[%c0_82, %c0_83, %c0_84], %77 {strides = array<i32>} : memref<2x1x8xf32, #tpu.memory_space<vmem>>, vector<1x1x8xf32>,
    %c1_85 = arith.constant 1 : index
    %c0_86 = arith.constant 0 : index
    %c0_87 = arith.constant 0 : index
    %78 = vector.load %arg7[%c1_85, %c0_86, %c0_87] : memref<2x1x8xf32, #tpu.memory_space<vmem>>, vector<1x1x8xf32>
    %79 = vector.shape_cast %78 : vector<1x1x8xf32> to vector<1x8xf32>
    %80 = arith.mulf %69, %69 : vector<64x8xf32>
    %cst_88 = arith.constant dense<0.000000e+00> : vector<8xf32>
    %81 = vector.multi_reduction <add>, %80, %cst_88 [0] : vector<64x8xf32> to vector<8xf32>
    %82 = vector.shape_cast %81 : vector<8xf32> to vector<1x8xf32>
    %83 = arith.addf %79, %82 : vector<1x8xf32>
    %c1_89 = arith.constant 1 : index
    %c0_90 = arith.constant 0 : index
    %c0_91 = arith.constant 0 : index
    %84 = vector.load %arg7[%c1_89, %c0_90, %c0_91] : memref<2x1x8xf32, #tpu.memory_space<vmem>>, vector<1x1x8xf32>
    %85 = vector.shape_cast %84 : vector<1x1x8xf32> to vector<1x8xf32>
    %86 = vector.shape_cast %83 : vector<1x8xf32> to vector<1x1x8xf32>
    tpu.vector_store %arg7[%c1_89, %c0_90, %c0_91], %86 {strides = array<i32>} : memref<2x1x8xf32, #tpu.memory_space<vmem>>, vector<1x1x8xf32>,
    %87 = arith.index_cast %arg0 : i32 to index
    %c0_92 = arith.constant 0 : index
    %c0_93 = arith.constant 0 : index
    %88 = vector.load %arg5[%87, %c0_92, %c0_93] : memref<2x64x8xf32, #tpu.memory_space<vmem>>, vector<1x64x8xf32>
    %89 = vector.shape_cast %88 : vector<1x64x8xf32> to vector<64x8xf32>
    %90 = vector.shape_cast %69 : vector<64x8xf32> to vector<1x64x8xf32>
    tpu.vector_store %arg5[%87, %c0_92, %c0_93], %90 {strides = array<i32>} : memref<2x64x8xf32, #tpu.memory_space<vmem>>, vector<1x64x8xf32>,
    %c1_i32 = arith.constant 1 : i32
    %91 = arith.cmpi eq, %arg0, %c1_i32 : i32
    %92 = arith.extui %91 : i1 to i32
    %c0_i32_94 = arith.constant 0 : i32
    %93 = arith.cmpi ne, %92, %c0_i32_94 : i32
    scf.if %93 {
      %c0_95 = arith.constant 0 : index
      %c0_96 = arith.constant 0 : index
      %c0_97 = arith.constant 0 : index
      %94 = vector.load %arg7[%c0_95, %c0_96, %c0_97] : memref<2x1x8xf32, #tpu.memory_space<vmem>>, vector<1x1x8xf32>
      %95 = vector.shape_cast %94 : vector<1x1x8xf32> to vector<1x8xf32>
      %cst_98 = arith.constant 7.812500e-03 : f32
      %96 = vector.broadcast %cst_98 : f32 to vector<1x8xf32>
      %97 = arith.mulf %95, %96 : vector<1x8xf32>
      %c1_99 = arith.constant 1 : index
      %c0_100 = arith.constant 0 : index
      %c0_101 = arith.constant 0 : index
      %98 = vector.load %arg7[%c1_99, %c0_100, %c0_101] : memref<2x1x8xf32, #tpu.memory_space<vmem>>, vector<1x1x8xf32>
      %99 = vector.shape_cast %98 : vector<1x1x8xf32> to vector<1x8xf32>
      %cst_102 = arith.constant 7.812500e-03 : f32
      %100 = vector.broadcast %cst_102 : f32 to vector<1x8xf32>
      %101 = arith.mulf %99, %100 : vector<1x8xf32>
      %102 = arith.mulf %97, %97 : vector<1x8xf32>
      %103 = arith.subf %101, %102 : vector<1x8xf32>
      %c0_103 = arith.constant 0 : index
      %c0_104 = arith.constant 0 : index
      %104 = vector.load %arg3[%c0_103, %c0_104] : memref<1x8xf32, #tpu.memory_space<vmem>>, vector<1x8xf32>
      %cst_105 = arith.constant 9.99999974E-6 : f32
      %105 = vector.broadcast %cst_105 : f32 to vector<1x8xf32>
      %106 = arith.addf %103, %105 : vector<1x8xf32>
      %107 = math.rsqrt %106 : vector<1x8xf32>
      %108 = arith.mulf %104, %107 : vector<1x8xf32>
      %c0_106 = arith.constant 0 : index
      %c0_107 = arith.constant 0 : index
      %109 = vector.load %arg4[%c0_106, %c0_107] : memref<1x8xf32, #tpu.memory_space<vmem>>, vector<1x8xf32>
      %110 = arith.mulf %97, %108 : vector<1x8xf32>
      %111 = arith.subf %109, %110 : vector<1x8xf32>
      %c0_108 = arith.constant 0 : index
      %c0_109 = arith.constant 0 : index
      %c0_110 = arith.constant 0 : index
      %112 = vector.load %arg5[%c0_108, %c0_109, %c0_110] : memref<2x64x8xf32, #tpu.memory_space<vmem>>, vector<2x64x8xf32>
      %113 = vector.shape_cast %108 : vector<1x8xf32> to vector<1x1x8xf32>
      %114 = vector.broadcast %113 : vector<1x1x8xf32> to vector<2x64x8xf32>
      %115 = arith.mulf %112, %114 : vector<2x64x8xf32>
      %116 = vector.shape_cast %111 : vector<1x8xf32> to vector<1x1x8xf32>
      %117 = vector.broadcast %116 : vector<1x1x8xf32> to vector<2x64x8xf32>
      %118 = arith.addf %115, %117 : vector<2x64x8xf32>
      %cst_111 = arith.constant 0.000000e+00 : f32
      %119 = vector.broadcast %cst_111 : f32 to vector<2x64x8xf32>
      %120 = arith.maximumf %118, %119 : vector<2x64x8xf32>
      %c0_112 = arith.constant 0 : index
      %c0_113 = arith.constant 0 : index
      %c0_114 = arith.constant 0 : index
      %121 = vector.load %arg5[%c0_112, %c0_113, %c0_114] : memref<2x64x8xf32, #tpu.memory_space<vmem>>, vector<2x64x8xf32>
      tpu.vector_store %arg5[%c0_112, %c0_113, %c0_114], %120 {strides = array<i32>} : memref<2x64x8xf32, #tpu.memory_space<vmem>>, vector<2x64x8xf32>,
    } else {
    }
    return
  }
  func.func @transform_0(%arg0: i32) -> (i32, i32, i32, i32, i32) {
    %c0_i32 = arith.constant 0 : i32
    %c0_i32_0 = arith.constant 0 : i32
    %c0_i32_1 = arith.constant 0 : i32
    %c0_i32_2 = arith.constant 0 : i32
    %c0_i32_3 = arith.constant 0 : i32
    return %c0_i32, %arg0, %c0_i32_0, %c0_i32_1, %c0_i32_2 : i32, i32, i32, i32, i32
  }
  func.func @transform_1(%arg0: i32) -> (i32, i32, i32) {
    %c0_i32 = arith.constant 0 : i32
    %c0_i32_0 = arith.constant 0 : i32
    %c0_i32_1 = arith.constant 0 : i32
    %c0_i32_2 = arith.constant 0 : i32
    return %c0_i32, %c0_i32_0, %c0_i32_1 : i32, i32, i32
  }
  func.func @transform_2(%arg0: i32) -> (i32, i32) {
    %c0_i32 = arith.constant 0 : i32
    %c0_i32_0 = arith.constant 0 : i32
    %c0_i32_1 = arith.constant 0 : i32
    return %c0_i32, %c0_i32_0 : i32, i32
  }
  func.func @transform_3(%arg0: i32) -> (i32, i32) {
    %c0_i32 = arith.constant 0 : i32
    %c0_i32_0 = arith.constant 0 : i32
    %c0_i32_1 = arith.constant 0 : i32
    return %c0_i32, %c0_i32_0 : i32, i32
  }
  func.func @transform_4(%arg0: i32) -> (i32, i32, i32) {
    %c0_i32 = arith.constant 0 : i32
    %c0_i32_0 = arith.constant 0 : i32
    %c0_i32_1 = arith.constant 0 : i32
    %c0_i32_2 = arith.constant 0 : i32
    return %c0_i32, %c0_i32_0, %c0_i32_1 : i32, i32, i32
  }
}

</mosaic_0001>

<bundles_post_ra>
// kernel: tpu_custom_call.1
= control target key start
LH: loop header
LB: loop body
LE: loop exit
PB: predicated region body
PF: predicated region fallthrough
CT: control target
= control target key end

     0   :  { %s2466_s15 = smov 0   ;;  %s2468_s16 = smov 0   ;;  %s2992_s0 = inlined_call_operand.vmem [shape: f32[4,2,8,8,4], index: 0, kind: input, shape index: {}]   ;;  %s2993_s1 = inlined_call_operand.vmem [shape: f32[9,4,8], index: 1, kind: input, shape index: {}]   ;;  %s2994_s2 = inlined_call_operand.vmem [shape: f32[1,8], index: 2, kind: input, shape index: {}]   ;;  %s2995_s3 = inlined_call_operand.vmem [shape: f32[1,8], index: 3, kind: input, shape index: {}]   ;;  %s2996_s4 = inlined_call_operand.vmem [shape: f32[2,64,8], index: 4, kind: output, shape index: {}]  }
   0x1   :  { %s2470_s17 = smov 0  }
   0x2 LB: > { %s2482_s18 = sadd.s32 4294967295, %s2438_s17   ;;  %s2485_s19 = sadd.s32 1, %s2438_s17   ;;  %s2438_s17 = sphi %s2470_s17, %s2999_s17   ;;  %s2434_s16 = sphi %s2468_s16, %s2998_s16   ;;  %s2430_s15 = sphi %s2466_s15, %s2997_s15  }
   0x3   : > { %s18_s20 = ssub.s32 %s2438_s17, %s2485_s19  ;;  %s21_s21 = sadd.s32 1, %s2434_s16 }
   0x4   : > { %p19_p0 = scmp.eq.s32.totalorder %s18_s20, 0  ;;  %p28_p1 = scmp.ne.s32.totalorder %s2434_s16, %s2430_s15 }
   0x5   : > { %p29_p2 = scmp.eq.s32.totalorder %s2438_s17, 0  ;;  %p1991_p4 = scmp.ge.s32.totalorder %s2438_s17, 2 }
   0x6   : > { %s2494_s22 = scalar_select %p19_p0, %s2434_s16, %s21_s21  }
   0x7   : > { %p30_p3 = por %p29_p2, %p28_p1  ;;  %147 = sbr.rel (%p1991_p4) target bundleno = 34 (0x22), region = 28 }
   0xe   : > { %150 = sbr.rel (!%p30_p3) target bundleno = 34 (0x22), region = 32  ;;  %s152_s23 = sand.u32 (%p30_p3), 1, %s2434_s16  }
   0xf   : > { %s2115_s24 = sshll.u32 (%p30_p3), %s2438_s17, 6  ;;  %s1992_s25 = sshll.u32 (%p30_p3), %s152_s23, 8 }
  0x10   : > { %s2502_s28 = scalar_lea.vmem (%p30_p3), %s2992_s0, %s2115_s24  ;;  %s2507_s29 = scalar_lea.vmem (%p30_p3), [#allocation4], %s1992_s25 }
  0x11   : > { %v247_v0 = vld [vmem:[%s2502_s28] sm:$0xff] (%p30_p3)  ;;  %v249_v1 = vld [vmem:[%s2502_s28 + $0x8] sm:$0xff] (%p30_p3)  ;;  %v251_v2 = vld [vmem:[%s2502_s28 + $0x10] sm:$0xff] (%p30_p3) }
  0x12   : > { %248 = vst [vmem:[%s2507_s29] sm:$0xff] (%p30_p3), %v247_v0  ;;  %250 = vst [vmem:[%s2507_s29 + $0x8] sm:$0xff] (%p30_p3), %v249_v1  ;;  %v253_v3 = vld [vmem:[%s2502_s28 + $0x18] sm:$0xff] (%p30_p3)  ;;  %v255_v4 = vld [vmem:[%s2502_s28 + $0x20] sm:$0xff] (%p30_p3) }
  0x13   : > { %252 = vst [vmem:[%s2507_s29 + $0x10] sm:$0xff] (%p30_p3), %v251_v2  ;;  %v257_v5 = vld [vmem:[%s2502_s28 + $0x28] sm:$0xff] (%p30_p3)  ;;  %254 = vst [vmem:[%s2507_s29 + $0x18] sm:$0xff] (%p30_p3), %v253_v3  ;;  %v259_v6 = vld [vmem:[%s2502_s28 + $0x30] sm:$0xff] (%p30_p3) }
  0x14   : > { %256 = vst [vmem:[%s2507_s29 + $0x20] sm:$0xff] (%p30_p3), %v255_v4  ;;  %258 = vst [vmem:[%s2507_s29 + $0x28] sm:$0xff] (%p30_p3), %v257_v5  ;;  %v261_v7 = vld [vmem:[%s2502_s28 + $0x38] sm:$0xff] (%p30_p3)  ;;  %v263_v8 = vld [vmem:[%s2502_s28 + $0x80] sm:$0xff] (%p30_p3) }
  0x15   : > { %260 = vst [vmem:[%s2507_s29 + $0x30] sm:$0xff] %v259_v6  ;;  %262 = vst [vmem:[%s2507_s29 + $0x38] sm:$0xff] %v261_v7  ;;  %v265_v9 = vld [vmem:[%s2502_s28 + $0x88] sm:$0xff]  ;;  %v267_v10 = vld [vmem:[%s2502_s28 + $0x90] sm:$0xff] }
  0x16   : > { %264 = vst [vmem:[%s2507_s29 + $0x40] sm:$0xff] %v263_v8  ;;  %v269_v11 = vld [vmem:[%s2502_s28 + $0x98] sm:$0xff]  ;;  %266 = vst [vmem:[%s2507_s29 + $0x48] sm:$0xff] %v265_v9  ;;  %v271_v12 = vld [vmem:[%s2502_s28 + $0xa0] sm:$0xff] }
  0x17   : > { %268 = vst [vmem:[%s2507_s29 + $0x50] sm:$0xff] %v267_v10  ;;  %270 = vst [vmem:[%s2507_s29 + $0x58] sm:$0xff] %v269_v11  ;;  %v273_v13 = vld [vmem:[%s2502_s28 + $0xa8] sm:$0xff]  ;;  %v275_v14 = vld [vmem:[%s2502_s28 + $0xb0] sm:$0xff] }
  0x18   : > { %272 = vst [vmem:[%s2507_s29 + $0x60] sm:$0xff] %v271_v12  ;;  %274 = vst [vmem:[%s2507_s29 + $0x68] sm:$0xff] %v273_v13  ;;  %v277_v15 = vld [vmem:[%s2502_s28 + $0xb8] sm:$0xff]  ;;  %v279_v16 = vld [vmem:[%s2502_s28 + $0x100] sm:$0xff] }
  0x19   : > { %276 = vst [vmem:[%s2507_s29 + $0x70] sm:$0xff] %v275_v14  ;;  %v281_v17 = vld [vmem:[%s2502_s28 + $0x108] sm:$0xff]  ;;  %278 = vst [vmem:[%s2507_s29 + $0x78] sm:$0xff] %v277_v15  ;;  %v283_v18 = vld [vmem:[%s2502_s28 + $0x110] sm:$0xff] }
  0x1a   : > { %280 = vst [vmem:[%s2507_s29 + $0x80] sm:$0xff] %v279_v16  ;;  %282 = vst [vmem:[%s2507_s29 + $0x88] sm:$0xff] %v281_v17  ;;  %v285_v19 = vld [vmem:[%s2502_s28 + $0x118] sm:$0xff]  ;;  %v287_v20 = vld [vmem:[%s2502_s28 + $0x120] sm:$0xff] }
  0x1b   : > { %284 = vst [vmem:[%s2507_s29 + $0x90] sm:$0xff] %v283_v18  ;;  %286 = vst [vmem:[%s2507_s29 + $0x98] sm:$0xff] %v285_v19  ;;  %v289_v21 = vld [vmem:[%s2502_s28 + $0x128] sm:$0xff]  ;;  %v291_v22 = vld [vmem:[%s2502_s28 + $0x130] sm:$0xff] }
  0x1c   : > { %288 = vst [vmem:[%s2507_s29 + $0xa0] sm:$0xff] %v287_v20  ;;  %v293_v23 = vld [vmem:[%s2502_s28 + $0x138] sm:$0xff]  ;;  %290 = vst [vmem:[%s2507_s29 + $0xa8] sm:$0xff] %v289_v21  ;;  %v295_v24 = vld [vmem:[%s2502_s28 + $0x180] sm:$0xff] }
  0x1d   : > { %292 = vst [vmem:[%s2507_s29 + $0xb0] sm:$0xff] %v291_v22  ;;  %294 = vst [vmem:[%s2507_s29 + $0xb8] sm:$0xff] %v293_v23  ;;  %v297_v25 = vld [vmem:[%s2502_s28 + $0x188] sm:$0xff]  ;;  %v299_v26 = vld [vmem:[%s2502_s28 + $0x190] sm:$0xff] }
  0x1e   : > { %296 = vst [vmem:[%s2507_s29 + $0xc0] sm:$0xff] %v295_v24  ;;  %298 = vst [vmem:[%s2507_s29 + $0xc8] sm:$0xff] %v297_v25  ;;  %v301_v27 = vld [vmem:[%s2502_s28 + $0x198] sm:$0xff]  ;;  %v303_v28 = vld [vmem:[%s2502_s28 + $0x1a0] sm:$0xff] }
  0x1f   : > { %300 = vst [vmem:[%s2507_s29 + $0xd0] sm:$0xff] %v299_v26  ;;  %v305_v29 = vld [vmem:[%s2502_s28 + $0x1a8] sm:$0xff]  ;;  %302 = vst [vmem:[%s2507_s29 + $0xd8] sm:$0xff] %v301_v27  ;;  %v307_v30 = vld [vmem:[%s2502_s28 + $0x1b0] sm:$0xff] }
  0x20   : > { %304 = vst [vmem:[%s2507_s29 + $0xe0] sm:$0xff] %v303_v28  ;;  %306 = vst [vmem:[%s2507_s29 + $0xe8] sm:$0xff] %v305_v29  ;;  %v309_v31 = vld [vmem:[%s2502_s28 + $0x1b8] sm:$0xff] }
  0x21   : > { %308 = vst [vmem:[%s2507_s29 + $0xf0] sm:$0xff] %v307_v30  ;;  %310 = vst [vmem:[%s2507_s29 + $0xf8] sm:$0xff] %v309_v31 }
  0x22 PF: > { %p1995_p5 = scmp.ge.s32.totalorder %s2438_s17, 1  ;;  %p315_p6 = scmp.lt.s32.totalorder %s2438_s17, 3 }
  0x24   : > { %p316_p7 = pnand %p1995_p5, %p315_p6 }
  0x25   : > { %s322_s30 = sand.u32 (!%p316_p7), 1, %s2430_s15   ;;  %p1997_p8 = scmp.ne.s32.totalorder (!%p316_p7), %s2482_s18, 0 }
  0x26   : > { %319 = sbr.rel (%p316_p7) target bundleno = 426 (0x1aa), region = 70  ;;  %s1996_s5 = sshll.u32 (!%p316_p7), %s322_s30, 8 }
  0x27   : > { %s2573_s6 = scalar_lea.vmem (!%p316_p7), [#allocation4], %s1996_s5 }
  0x2d   : > { %345 = sbr.rel (%p1997_p8) target bundleno = 57 (0x39), region = 78  ;;  %vm346_vm0 = vcmask (!%p1997_p8), 31744   ;;  %vm348_vm1 = vcmask (!%p1997_p8), 25600   ;;  %vm368_vm2 = vcmask (!%p1997_p8), 57344   ;;  %v2440_v32 = vmov (!%p1997_p8), 0.0  }
  0x2e   : > { %347 = vst.msk [vmem:[#allocation2] sm:$0xff] (!%p1997_p8), %vm346_vm0, %v2440_v32  ;;  %350 = vst.msk [vmem:[#allocation2 + $0x10] sm:$0xff] (!%p1997_p8), %vm346_vm0, %v2440_v32 }
  0x2f   : > { %352 = vst.msk [vmem:[#allocation2 + $0x20] sm:$0xff] (!%p1997_p8), %vm346_vm0, %v2440_v32  ;;  %354 = vst.msk [vmem:[#allocation2 + $0x30] sm:$0xff] (!%p1997_p8), %vm346_vm0, %v2440_v32 }
  0x30   : > { %356 = vst.msk [vmem:[#allocation2 + $0x40] sm:$0xff] (!%p1997_p8), %vm346_vm0, %v2440_v32  ;;  %358 = vst.msk [vmem:[#allocation2 + $0x50] sm:$0xff] (!%p1997_p8), %vm346_vm0, %v2440_v32 }
  0x31   : > { %360 = vst.msk [vmem:[#allocation2 + $0x60] sm:$0xff] (!%p1997_p8), %vm346_vm0, %v2440_v32  ;;  %362 = vst.msk [vmem:[#allocation2 + $0x70] sm:$0xff] (!%p1997_p8), %vm346_vm0, %v2440_v32 }
  0x32   : > { %364 = vst.msk [vmem:[#allocation2 + $0x80] sm:$0xff] (!%p1997_p8), %vm346_vm0, %v2440_v32  ;;  %366 = vst.msk [vmem:[#allocation2 + $0x90] sm:$0xff] (!%p1997_p8), %vm346_vm0, %v2440_v32 }
  0x33   : > { %349 = vst.msk [vmem:[#allocation2 + $0x8] sm:$0x3] (!%p1997_p8), %vm348_vm1, %v2440_v32  ;;  %351 = vst.msk [vmem:[#allocation2 + $0x18] sm:$0x3] (!%p1997_p8), %vm348_vm1, %v2440_v32 }
  0x34   : > { %353 = vst.msk [vmem:[#allocation2 + $0x28] sm:$0x3] %vm348_vm1, %v2440_v32  ;;  %355 = vst.msk [vmem:[#allocation2 + $0x38] sm:$0x3] %vm348_vm1, %v2440_v32 }
  0x35   : > { %357 = vst.msk [vmem:[#allocation2 + $0x48] sm:$0x3] %vm348_vm1, %v2440_v32  ;;  %359 = vst.msk [vmem:[#allocation2 + $0x58] sm:$0x3] %vm348_vm1, %v2440_v32 }
  0x36   : > { %361 = vst.msk [vmem:[#allocation2 + $0x68] sm:$0x3] %vm348_vm1, %v2440_v32  ;;  %363 = vst.msk [vmem:[#allocation2 + $0x78] sm:$0x3] %vm348_vm1, %v2440_v32 }
  0x37   : > { %365 = vst.msk [vmem:[#allocation2 + $0x88] sm:$0x3] %vm348_vm1, %v2440_v32  ;;  %367 = vst.msk [vmem:[#allocation2 + $0x98] sm:$0x3] %vm348_vm1, %v2440_v32 }
  0x38   : > { %369 = vst.msk [vmem:[#allocation3] sm:$0x1] %vm368_vm2, %v2440_v32  ;;  %370 = vst.msk [vmem:[#allocation3 + $0x1] sm:$0x1] %vm368_vm2, %v2440_v32 }
  0x39 PF: > { %v2022_v33 = vld [vmem:[%s2993_s1 + $0x4] sm:$0xf]  ;;  %vm483_vm3 = vcmask 1043456   ;;  %v2594_v34 = vld [vmem:[%s2993_s1 + $0x10] sm:$0xf]  ;;  %vm431_vm4 = vcmask 31744  }
  0x3a   : > { %2197 = vmatprep.subr.msk.mxu1 %vm483_vm3, %v2022_v33  ;;  %2253 = vmatprep.subr.msk.mxu0 %vm483_vm3, %v2594_v34  ;;  %v371_v36 = vld [vmem:[%s2573_s6] sm:$0xff]  ;;  %v2617_v43 = vld [vmem:[%s2993_s1 + $0x14] sm:$0xf]  ;;  %v372_v44 = vld [vmem:[%s2573_s6 + $0x8] sm:$0xff]  ;;  %s2111_s29 = sshll.u32 %s2482_s18, 6  ;;  %vm1776_vm5 = vcmask 64512  }
  0x3b   : > { %v1998_v37 = vld [vmem:[%s2573_s6 + $0x40] sm:$0xff]  ;;  %2198 = vmatpush3.msk.msra.mxu1 %vm483_vm3, %v2022_v33  ;;  %2254 = vmatpush3.msk.msra.mxu0 %vm483_vm3, %v2594_v34  ;;  %v1999_v45 = vld [vmem:[%s2573_s6 + $0x48] sm:$0xff]  ;;  %v373_v49 = vld [vmem:[%s2573_s6 + $0x10] sm:$0xff]  ;;  %vm1799_vm6 = vcmask 57344   ;;  %p2112_p9 = scmp.ne.s32.totalorder %s2482_s18, 1 }
  0x3c   : > { %v388_v38 = vmax.f32 %v371_v36, %v1998_v37  ;;  %v2006_v39 = vld [vmem:[%s2573_s6 + $0x80] sm:$0xff]  ;;  %2267 = vmatprep.subr.msk.mxu0 %vm483_vm3, %v2617_v43  ;;  %v389_v46 = vmax.f32 %v372_v44, %v1999_v45  ;;  %v2007_v47 = vld [vmem:[%s2573_s6 + $0x88] sm:$0xff]  ;;  %v2000_v52 = vld [vmem:[%s2573_s6 + $0x50] sm:$0xff] }
  0x3d   : > { %v2014_v40 = vld [vmem:[%s2573_s6 + $0xc0] sm:$0xff]  ;;  %v2015_v48 = vld [vmem:[%s2573_s6 + $0xc8] sm:$0xff]  ;;  %v2008_v53 = vld [vmem:[%s2573_s6 + $0x90] sm:$0xff]  ;;  %v390_v55 = vmax.f32 %v373_v49, %v2000_v52 }
  0x3e   : > { %v2608_v41 = vld [vmem:[%s2993_s1] sm:$0xf]  ;;  %v414_v42 = vmax.f32 %v2006_v39, %v2014_v40  ;;  %v415_v51 = vmax.f32 %v2007_v47, %v2015_v48  ;;  %v2016_v54 = vld [vmem:[%s2573_s6 + $0xd0] sm:$0xff]  ;;  %v376_v7 = vld [vmem:[%s2573_s6 + $0x28] sm:$0xff] }
  0x3f   : > { %v449_v35 = vld [vmem:[#allocation2 + $0x1] sm:$0xff]  ;;  %2211 = vmatprep.subr.msk.mxu1 %vm483_vm3, %v2608_v41  ;;  %v416_v56 = vmax.f32 %v2008_v53, %v2016_v54  ;;  %v2003_v8 = vld [vmem:[%s2573_s6 + $0x68] sm:$0xff]  ;;  %v377_v13 = vld [vmem:[%s2573_s6 + $0x30] sm:$0xff] }
  0x40   : > { %2199 = vmatprep.mubr.msk.f32.mxu1 %vm431_vm4, %v449_v35  ;;  %v422_v50 = vmax.f32 %v388_v38, %v414_v42  ;;  %v374_v57 = vld [vmem:[%s2573_s6 + $0x18] sm:$0xff]  ;;  %v423_v60 = vmax.f32 %v389_v46, %v415_v51  ;;  %v375_v63 = vld [vmem:[%s2573_s6 + $0x20] sm:$0xff]  ;;  %v2011_v9 = vld [vmem:[%s2573_s6 + $0xa8] sm:$0xff]  ;;  %v393_v11 = vmax.f32 %v376_v7, %v2003_v8 }
  0x41   : > { %v2001_v58 = vld [vmem:[%s2573_s6 + $0x58] sm:$0xff]  ;;  %v2002_v0 = vld [vmem:[%s2573_s6 + $0x60] sm:$0xff]  ;;  %v424_v1 = vmax.f32 %v390_v55, %v416_v56  ;;  %v2019_v12 = vld [vmem:[%s2573_s6 + $0xe8] sm:$0xff] }
  0x42   : > { %v2009_v59 = vld [vmem:[%s2573_s6 + $0x98] sm:$0xff]  ;;  %432 = vst.msk [vmem:[#allocation2 + $0x11] sm:$0xff] %vm431_vm4, %v422_v50  ;;  %v391_v61 = vmax.f32 %v374_v57, %v2001_v58  ;;  %v392_v3 = vmax.f32 %v375_v63, %v2002_v0  ;;  %v2010_v4 = vld [vmem:[%s2573_s6 + $0xa0] sm:$0xff]  ;;  %433 = vst.msk [vmem:[#allocation2 + $0x21] sm:$0xff] %vm431_vm4, %v423_v60  ;;  %v419_v16 = vmax.f32 %v2011_v9, %v2019_v12 }
  0x43   : > { %v2017_v62 = vld [vmem:[%s2573_s6 + $0xd8] sm:$0xff]  ;;  %v2018_v5 = vld [vmem:[%s2573_s6 + $0xe0] sm:$0xff]  ;;  %434 = vst.msk [vmem:[#allocation2 + $0x31] sm:$0xff] %vm431_vm4, %v424_v1  ;;  %v2004_v14 = vld [vmem:[%s2573_s6 + $0x70] sm:$0xff] }
  0x44   : > { %v417_v2 = vmax.f32 %v2009_v59, %v2017_v62  ;;  %v418_v6 = vmax.f32 %v2010_v4, %v2018_v5  ;;  %v394_v17 = vmax.f32 %v377_v13, %v2004_v14  ;;  %v2012_v18 = vld [vmem:[%s2573_s6 + $0xb0] sm:$0xff]  ;;  %v378_v21 = vld [vmem:[%s2573_s6 + $0x38] sm:$0xff]  ;;  %v427_v23 = vmax.f32 %v393_v11, %v419_v16  ;;  %v2041_v35 = vld [vmem:[%s2993_s1 + $0x8] sm:$0xf] }
  0x45   : > { %v2020_v19 = vld [vmem:[%s2573_s6 + $0xf0] sm:$0xff]  ;;  %v2005_v22 = vld [vmem:[%s2573_s6 + $0x78] sm:$0xff]  ;;  %v2051_v50 = vld [vmem:[%s2993_s1 + $0xc] sm:$0xf] }
  0x46   : > { %v425_v10 = vmax.f32 %v391_v61, %v417_v2  ;;  %v426_v15 = vmax.f32 %v392_v3, %v418_v6  ;;  %v420_v20 = vmax.f32 %v2012_v18, %v2020_v19  ;;  %v395_v24 = vmax.f32 %v378_v21, %v2005_v22  ;;  %v2013_v25 = vld [vmem:[%s2573_s6 + $0xb8] sm:$0xff]  ;;  %437 = vst.msk [vmem:[#allocation2 + $0x61] sm:$0xff] %vm431_vm4, %v427_v23  ;;  %v724_v59 = vld [vmem:[#allocation2 + $0x2] sm:$0xff]  ;;  %v1332_v61 = vld [vmem:[#allocation2 + $0x90] sm:$0xff] }
  0x47   : > { %v2021_v26 = vld [vmem:[%s2573_s6 + $0xf8] sm:$0xff]  ;;  %v1482_v63 = vld [vmem:[#allocation2 + $0x91] sm:$0xff]  ;;  %s2829_s6 = scalar_lea.vmem %s2996_s4, %s2111_s29 }
  0x48   : > { %435 = vst.msk [vmem:[#allocation2 + $0x41] sm:$0xff] %vm431_vm4, %v425_v10  ;;  %436 = vst.msk [vmem:[#allocation2 + $0x51] sm:$0xff] %vm431_vm4, %v426_v15  ;;  %v428_v28 = vmax.f32 %v394_v17, %v420_v20  ;;  %v421_v29 = vmax.f32 %v2013_v25, %v2021_v26  ;;  %v2081_v31 = vld [vmem:[%s2993_s1 + $0x18] sm:$0xf]  ;;  %v440_v44 = vld [vmem:[#allocation2] sm:$0xff] }
  0x49   : > { %v450_v27 = vld [vmem:[#allocation2 + $0x11] sm:$0xff]  ;;  %v2659_v30 = vld [vmem:[#allocation2 + $0x21] sm:$0xff] }
  0x4a   : > { %2200 = vmatmul.mubr.msk.f32.vlgmr.msra.gmra.mrb[0].mxu1 %vm431_vm4, %v450_v27  ;;  %2255 = vmatprep.mubr.msk.f32.mxu0 %vm431_vm4, %v450_v27  ;;  %438 = vst.msk [vmem:[#allocation2 + $0x71] sm:$0xff] %vm431_vm4, %v428_v28  ;;  %v429_v32 = vmax.f32 %v395_v24, %v421_v29  ;;  %v2669_v33 = vld [vmem:[#allocation2 + $0x31] sm:$0xff]  ;;  %v2692_v39 = vld [vmem:[#allocation2 + $0x22] sm:$0xff] }
  0x4b   : > { %2212 = vmatpush3.msk.msra.mxu1 %vm483_vm3, %v2608_v41  ;;  %2256 = vmatmul.mubr.msk.f32.vlgmr.msra.gmra.mrb[0].mxu0 %vm431_vm4, %v2659_v30  ;;  %v1174_v37 = vld [vmem:[#allocation2 + $0x12] sm:$0xff]  ;;  %v442_v48 = vld [vmem:[#allocation2 + $0x20] sm:$0xff] }
  0x4c   : > { %2202 = vmatprep.mubr.msk.f32.mxu1 %vm431_vm4, %v2659_v30  ;;  %2268 = vmatpush3.msk.msra.mxu0 %vm483_vm3, %v2617_v43  ;;  %439 = vst.msk [vmem:[#allocation2 + $0x81] sm:$0xff] %vm431_vm4, %v429_v32  ;;  %v2698_v41 = vld [vmem:[#allocation2 + $0x32] sm:$0xff]  ;;  %v2091_v43 = vld [vmem:[%s2993_s1 + $0x1c] sm:$0xf]  ;;  %v2101_v58 = vld [vmem:[%s2993_s1 + $0x20] sm:$0xf] }
  0x4d   : > { %2258 = vmatprep.mubr.msk.f32.mxu0 %vm431_vm4, %v2669_v33  ;;  %2281 = vmatprep.subr.msk.mxu0 %vm483_vm3, %v2081_v31  ;;  %v2694_v40 = vld [vmem:[#allocation2 + $0x61] sm:$0xff]  ;;  %v441_v47 = vld [vmem:[#allocation2 + $0x10] sm:$0xff] }
  0x4e   : > { %2203 = vmatmul.mubr.msk.f32.gmra.mrb[2].mxu1 %vm431_vm4, %v2669_v33  ;;  %2225 = vmatprep.subr.msk.mxu1 %vm483_vm3, %v2041_v35  ;;  %v2724_v49 = vld [vmem:[#allocation2 + $0x62] sm:$0xff]  ;;  %v443_v52 = vld [vmem:[#allocation2 + $0x30] sm:$0xff] }
  0x4f   : > { %v2681_v36 = vld [vmem:[#allocation2 + $0x41] sm:$0xff]  ;;  %v2686_v38 = vld [vmem:[#allocation2 + $0x51] sm:$0xff] }
  0x50   : > { %2205 = vmatprep.mubr.msk.f32.mxu1 %vm431_vm4, %v2681_v36  ;;  %2259 = vmatmul.mubr.msk.f32.gmra.mrb[2].mxu0 %vm431_vm4, %v2681_v36  ;;  %v2712_v45 = vld [vmem:[#allocation2 + $0x42] sm:$0xff]  ;;  %v2716_v46 = vld [vmem:[#allocation2 + $0x52] sm:$0xff] }
  0x51   : > { %2269 = vmatprep.mubr.msk.f32.mxu0 %vm431_vm4, %v1174_v37  ;;  %v2702_v42 = vld [vmem:[#allocation2 + $0x71] sm:$0xff]  ;;  %v444_v53 = vld [vmem:[#allocation2 + $0x40] sm:$0xff] }
  0x52   : > { %2206 = vmatmul.mubr.msk.f32.gmra.mrb[4].mxu1 %vm431_vm4, %v2686_v38  ;;  %v2730_v51 = vld [vmem:[#allocation2 + $0x72] sm:$0xff]  ;;  %v446_v56 = vld [vmem:[#allocation2 + $0x60] sm:$0xff] }
  0x53   : > { %2208 = vmatprep.mubr.msk.f32.mxu1 %vm431_vm4, %v2694_v40  ;;  %v2739_v54 = vld [vmem:[#allocation2 + $0x82] sm:$0xff]  ;;  %v445_v55 = vld [vmem:[#allocation2 + $0x50] sm:$0xff] }
  0x54   : > { %2270 = vmatmul.mubr.msk.f32.vlgmr.msra.gmra.mrb[0].mxu0 %vm431_vm4, %v2692_v39  ;;  %v447_v57 = vld [vmem:[#allocation2 + $0x70] sm:$0xff]  ;;  %v1331_v60 = vld [vmem:[#allocation2 + $0x80] sm:$0xff] }
  0x55   : > { %2282 = vmatpush3.msk.msra.mxu0 %vm483_vm3, %v2081_v31  ;;  %2272 = vmatprep.mubr.msk.f32.mxu0 %vm431_vm4, %v2698_v41  ;;  %v1481_v62 = vld [vmem:[#allocation2 + $0x81] sm:$0xff] }
  0x56   : > { %2209 = vmatmul.mubr.msk.f32.gmra.mrb[6].mxu1 %vm431_vm4, %v2702_v42  ;;  %2295 = vmatprep.subr.msk.mxu0 %vm483_vm3, %v2091_v43 }
  0x57   : > { %2213 = vmatprep.mubr.msk.f32.mxu1 %vm431_vm4, %v440_v44 }
  0x58   : > { %2273 = vmatmul.mubr.msk.f32.gmra.mrb[2].mxu0 %vm431_vm4, %v2712_v45 }
  0x59   : > { %2275 = vmatprep.mubr.msk.f32.mxu0 %vm431_vm4, %v2716_v46 }
  0x5a   : > { %2214 = vmatmul.mubr.msk.f32.vlgmr.msra.gmra.mrb[0].mxu1 %vm431_vm4, %v441_v47 }
  0x5b   : > { %2226 = vmatpush3.msk.msra.mxu1 %vm483_vm3, %v2041_v35  ;;  %2216 = vmatprep.mubr.msk.f32.mxu1 %vm431_vm4, %v442_v48 }
  0x5c   : > { %2276 = vmatmul.mubr.msk.f32.gmra.mrb[4].mxu0 %vm431_vm4, %v2724_v49  ;;  %2239 = vmatprep.subr.msk.mxu1 %vm483_vm3, %v2051_v50 }
  0x5d   : > { %2278 = vmatprep.mubr.msk.f32.mxu0 %vm431_vm4, %v2730_v51 }
  0x5e   : > { %2217 = vmatmul.mubr.msk.f32.gmra.mrb[2].mxu1 %vm431_vm4, %v443_v52 }
  0x5f   : > { %2219 = vmatprep.mubr.msk.f32.mxu1 %vm431_vm4, %v444_v53 }
  0x60   : > { %2279 = vmatmul.mubr.msk.f32.gmra.mrb[6].mxu0 %vm431_vm4, %v2739_v54 }
  0x61   : > { %2283 = vmatprep.mubr.msk.f32.mxu0 %vm431_vm4, %v442_v48 }
  0x62   : > { %2220 = vmatmul.mubr.msk.f32.gmra.mrb[4].mxu1 %vm431_vm4, %v445_v55 }
  0x63   : > { %2222 = vmatprep.mubr.msk.f32.mxu1 %vm431_vm4, %v446_v56 }
  0x64   : > { %2284 = vmatmul.mubr.msk.f32.vlgmr.msra.gmra.mrb[0].mxu0 %vm431_vm4, %v443_v52 }
  0x65   : > { %2296 = vmatpush3.msk.msra.mxu0 %vm483_vm3, %v2091_v43  ;;  %2286 = vmatprep.mubr.msk.f32.mxu0 %vm431_vm4, %v444_v53 }
  0x66   : > { %2223 = vmatmul.mubr.msk.f32.gmra.mrb[6].mxu1 %vm431_vm4, %v447_v57  ;;  %2309 = vmatprep.subr.msk.mxu0 %vm483_vm3, %v2101_v58 }
  0x67   : > { %2227 = vmatprep.mubr.msk.f32.mxu1 %vm431_vm4, %v724_v59 }
  0x68   : > { %2287 = vmatmul.mubr.msk.f32.gmra.mrb[2].mxu0 %vm431_vm4, %v445_v55 }
  0x69   : > { %2289 = vmatprep.mubr.msk.f32.mxu0 %vm431_vm4, %v446_v56 }
  0x6a   : > { %2228 = vmatmul.mubr.msk.f32.vlgmr.msra.gmra.mrb[0].mxu1 %vm431_vm4, %v1174_v37 }
  0x6b   : > { %2240 = vmatpush3.msk.msra.mxu1 %vm483_vm3, %v2051_v50  ;;  %2230 = vmatprep.mubr.msk.f32.mxu1 %vm431_vm4, %v2692_v39 }
  0x6c   : > { %2290 = vmatmul.mubr.msk.f32.gmra.mrb[4].mxu0 %vm431_vm4, %v447_v57  ;;  %2323 = vmatprep.subr.msk.mxu1 %vm483_vm3, %v2594_v34 }
  0x6d   : > { %2292 = vmatprep.mubr.msk.f32.mxu0 %vm431_vm4, %v1331_v60 }
  0x6e   : > { %2231 = vmatmul.mubr.msk.f32.gmra.mrb[2].mxu1 %vm431_vm4, %v2698_v41 }
  0x6f   : > { %2233 = vmatprep.mubr.msk.f32.mxu1 %vm431_vm4, %v2712_v45 }
  0x70   : > { %2293 = vmatmul.mubr.msk.f32.gmra.mrb[6].mxu0 %vm431_vm4, %v1332_v61 }
  0x71   : > { %2297 = vmatprep.mubr.msk.f32.mxu0 %vm431_vm4, %v2659_v30 }
  0x72   : > { %2234 = vmatmul.mubr.msk.f32.gmra.mrb[4].mxu1 %vm431_vm4, %v2716_v46 }
  0x73   : > { %2236 = vmatprep.mubr.msk.f32.mxu1 %vm431_vm4, %v2724_v49 }
  0x74   : > { %2298 = vmatmul.mubr.msk.f32.vlgmr.msra.gmra.mrb[0].mxu0 %vm431_vm4, %v2669_v33 }
  0x75   : > { %2310 = vmatpush3.msk.msra.mxu0 %vm483_vm3, %v2101_v58  ;;  %2300 = vmatprep.mubr.msk.f32.mxu0 %vm431_vm4, %v2681_v36 }
  0x76   : > { %2237 = vmatmul.mubr.msk.f32.gmra.mrb[6].mxu1 %vm431_vm4, %v2730_v51 }
  0x77   : > { %2241 = vmatprep.mubr.msk.f32.mxu1 %vm431_vm4, %v441_v47 }
  0x78   : > { %2301 = vmatmul.mubr.msk.f32.gmra.mrb[2].mxu0 %vm431_vm4, %v2686_v38 }
  0x79   : > { %2303 = vmatprep.mubr.msk.f32.mxu0 %vm431_vm4, %v2694_v40 }
  0x7a   : > { %2242 = vmatmul.mubr.msk.f32.vlgmr.msra.gmra.mrb[0].mxu1 %vm431_vm4, %v442_v48 }
  0x7b   : > { %2324 = vmatpush3.msk.msra.mxu1 %vm483_vm3, %v2594_v34  ;;  %2244 = vmatprep.mubr.msk.f32.mxu1 %vm431_vm4, %v443_v52  ;;  %v1632_v34 = vld [vmem:[#allocation2 + $0x92] sm:$0xff] }
  0x7c   : > { %2304 = vmatmul.mubr.msk.f32.gmra.mrb[4].mxu0 %vm431_vm4, %v2702_v42 }
  0x7d   : > { %2306 = vmatprep.mubr.msk.f32.mxu0 %vm431_vm4, %v1481_v62 }
  0x7e   : > { %2245 = vmatmul.mubr.msk.f32.gmra.mrb[2].mxu1 %vm431_vm4, %v444_v53 }
  0x7f   : > { %2247 = vmatprep.mubr.msk.f32.mxu1 %vm431_vm4, %v445_v55 }
  0x80   : > { %2307 = vmatmul.mubr.msk.f32.gmra.mrb[6].mxu0 %vm431_vm4, %v1482_v63 }
  0x81   : > { %2311 = vmatprep.mubr.msk.f32.mxu0 %vm431_vm4, %v2692_v39 }
  0x82   : > { %2248 = vmatmul.mubr.msk.f32.gmra.mrb[4].mxu1 %vm431_vm4, %v446_v56 }
  0x83   : > { %2250 = vmatprep.mubr.msk.f32.mxu1 %vm431_vm4, %v447_v57 }
  0x84   : > { %2312 = vmatmul.mubr.msk.f32.vlgmr.msra.gmra.mrb[0].mxu0 %vm431_vm4, %v2698_v41 }
  0x85   : > { %2314 = vmatprep.mubr.msk.f32.mxu0 %vm431_vm4, %v2712_v45 }
  0x86   : > { %2251 = vmatmul.mubr.msk.f32.gmra.mrb[6].mxu1 %vm431_vm4, %v1331_v60 }
  0x87   : > { %2261 = vmatprep.mubr.msk.f32.mxu1 %vm431_vm4, %v2686_v38 }
  0x88   : > { %2315 = vmatmul.mubr.msk.f32.gmra.mrb[2].mxu0 %vm431_vm4, %v2716_v46 }
  0x89   : > { %2317 = vmatprep.mubr.msk.f32.mxu0 %vm431_vm4, %v2724_v49 }
  0x8a   : > { %2262 = vmatmul.mubr.msk.f32.vlgmr.msra.gmra.mrb[4].mxu1 %vm431_vm4, %v2694_v40 }
  0x8b   : > { %2264 = vmatprep.mubr.msk.f32.mxu1 %vm431_vm4, %v2702_v42 }
  0x8c   : > { %2318 = vmatmul.mubr.msk.f32.gmra.mrb[4].mxu0 %vm431_vm4, %v2730_v51 }
  0x8d   : > { %2320 = vmatprep.mubr.msk.f32.mxu0 %vm431_vm4, %v2739_v54 }
  0x8e   : > { %2265 = vmatmul.mubr.msk.f32.gmra.mrb[6].mxu1 %vm431_vm4, %v1481_v62 }
  0x90   : > { %2321 = vmatmul.mubr.msk.f32.gmra.mrb[6].mxu0 %vm431_vm4, %v1632_v34 }
 0x14d   : > { %v2243_v0 = vpop.f32.mrb[0].mxu1 }
 0x14e   : > { %v977_v1 = vpop.f32.mrb[1].mxu1 }
 0x151   : > { %v2246_v2 = vpop.f32.mrb[2].mxu1 }
 0x152   : > { %v987_v3 = vpop.f32.mrb[3].mxu1 }
 0x157   : > { %v2313_v4 = vpop.f32.mrb[0].mxu0 }
 0x158   : > { %v2325_v5 = vadd.f32 %v2313_v4, %v2243_v0  ;;  %v1728_v6 = vpop.f32.mrb[1].mxu0 }
 0x159   : > { %v2326_v7 = vadd.f32 %v1728_v6, %v977_v1 }
 0x15a   : > { %v1778_v8 = vsel %vm1776_vm5, %v2325_v5, 0.0  ;;  %v1804_v9 = vmul.f32 %v2325_v5, %v2325_v5  ;;  %1837 = vst.msk [vmem:[%s2829_s6 + $0x8] sm:$0xff] %vm1776_vm5, %v2325_v5 }
 0x15b   : > { %v1777_v10 = vsel %vm1776_vm5, %v2326_v7, 0.0  ;;  %v1803_v11 = vmul.f32 %v2326_v7, %v2326_v7  ;;  %1836 = vst.msk [vmem:[%s2829_s6] sm:$0xff] %vm1776_vm5, %v2326_v7  ;;  %v2316_v12 = vpop.f32.mrb[2].mxu0  ;;  %v1775_v7 = vld [vmem:[#allocation3] sm:$0x1] }
 0x15c   : > { %v1812_v13 = vsel %vm1776_vm5, %v1804_v9, 0.0  ;;  %v1779_v14 = vadd.f32 %v1778_v8, %v1777_v10  ;;  %v2327_v15 = vadd.f32 %v2316_v12, %v2246_v2  ;;  %v1738_v16 = vpop.f32.mrb[3].mxu0  ;;  %v1802_v10 = vld [vmem:[#allocation3 + $0x1] sm:$0x1] }
 0x15d   : > { %v1811_v17 = vsel %vm1776_vm5, %v1803_v11, 0.0  ;;  %v2328_v18 = vadd.f32 %v1738_v16, %v987_v3  ;;  %v2263_v19 = vpop.f32.mrb[4].mxu1 }
 0x15e   : > { %v1813_v20 = vadd.f32 %v1812_v13, %v1811_v17  ;;  %1839 = vst.msk [vmem:[%s2829_s6 + $0x18] sm:$0xff] %vm1776_vm5, %v2327_v15  ;;  %v1147_v21 = vpop.f32.mrb[5].mxu1  ;;  %v1806_v22 = vmul.f32 %v2327_v15, %v2327_v15  ;;  %v1782_v29 = vsel %vm1776_vm5, %v2327_v15, 0.0 }
 0x15f   : > { %v1780_v23 = vsel %vm1776_vm5, %v2328_v18, 0.0  ;;  %v1805_v24 = vmul.f32 %v2328_v18, %v2328_v18  ;;  %1838 = vst.msk [vmem:[%s2829_s6 + $0x10] sm:$0xff] %vm1776_vm5, %v2328_v18  ;;  %v2319_v25 = vpop.f32.mrb[4].mxu0 }
 0x160   : > { %v1781_v26 = vadd.f32 %v1780_v23, %v1779_v14  ;;  %v2329_v27 = vadd.f32 %v2319_v25, %v2263_v19  ;;  %v1748_v28 = vpop.f32.mrb[5].mxu0  ;;  %v1816_v37 = vsel %vm1776_vm5, %v1806_v22, 0.0  ;;  %v1854_v23 = vld [vmem:[%s2994_s2] sm:$0x1] (!%p2112_p9) }
 0x161   : > { %v1814_v30 = vsel %vm1776_vm5, %v1805_v24, 0.0  ;;  %v2330_v31 = vadd.f32 %v1748_v28, %v1147_v21  ;;  %v2266_v32 = vpop.f32.mrb[6].mxu1  ;;  %v1878_v21 = vlaneseq (!%p2112_p9) }
 0x162   : > { %v1815_v33 = vadd.f32 %v1814_v30, %v1813_v20  ;;  %1841 = vst.msk [vmem:[%s2829_s6 + $0x28] sm:$0xff] %vm1776_vm5, %v2329_v27  ;;  %v1783_v35 = vadd.f32 %v1782_v29, %v1781_v26  ;;  %v1157_v36 = vpop.f32.mrb[7].mxu1  ;;  %v1808_v38 = vmul.f32 %v2329_v27, %v2329_v27  ;;  %v1786_v46 = vsel %vm1776_vm5, %v2329_v27, 0.0  ;;  %v1858_v27 = vld [vmem:[%s2995_s3] sm:$0x1] (!%p2112_p9) }
 0x163   : > { %v1784_v39 = vsel %vm1776_vm5, %v2330_v31, 0.0  ;;  %v1807_v40 = vmul.f32 %v2330_v31, %v2330_v31  ;;  %1840 = vst.msk [vmem:[%s2829_s6 + $0x20] sm:$0xff] %vm1776_vm5, %v2330_v31  ;;  %v2322_v41 = vpop.f32.mrb[6].mxu0  ;;  %v1879_v22 = vshrl.u32 (!%p2112_p9), %v1878_v21, 7 }
 0x164   : > { %v1785_v42 = vadd.f32 %v1784_v39, %v1783_v35  ;;  %v1817_v43 = vadd.f32 %v1816_v37, %v1815_v33  ;;  %v2331_v44 = vadd.f32 %v2322_v41, %v2266_v32  ;;  %v1758_v45 = vpop.f32.mrb[7].mxu0  ;;  %v1820_v51 = vsel %vm1776_vm5, %v1808_v38, 0.0 }
 0x165   : > { %v1818_v47 = vsel %vm1776_vm5, %v1807_v40, 0.0  ;;  %v2332_v48 = vadd.f32 %v1758_v45, %v1157_v36  ;;  %v1880_v24 = vsub.s32 (!%p2112_p9), 0, %v1879_v22 }
 0x166   : > { %v1819_v49 = vadd.f32 %v1818_v47, %v1817_v43  ;;  %1843 = vst.msk [vmem:[%s2829_s6 + $0x38] sm:$0xff] %vm1776_vm5, %v2331_v44  ;;  %v1787_v50 = vadd.f32 %v1786_v46, %v1785_v42  ;;  %v1810_v52 = vmul.f32 %v2331_v44, %v2331_v44  ;;  %v1790_v57 = vsel %vm1776_vm5, %v2331_v44, 0.0 }
 0x167   : > { %v1788_v53 = vsel %vm1776_vm5, %v2332_v48, 0.0  ;;  %v1809_v54 = vmul.f32 %v2332_v48, %v2332_v48  ;;  %1842 = vst.msk [vmem:[%s2829_s6 + $0x30] sm:$0xff] %vm1776_vm5, %v2332_v48 }
 0x168   : > { %v1789_v55 = vadd.f32 %v1788_v53, %v1787_v50  ;;  %v1821_v56 = vadd.f32 %v1820_v51, %v1819_v49  ;;  %v1824_v61 = vsel %vm1776_vm5, %v1810_v52, 0.0 }
 0x169   : > { %v1822_v58 = vsel %vm1776_vm5, %v1809_v54, 0.0 }
 0x16a   : > { %v1791_v59 = vadd.f32 %v1790_v57, %v1789_v55  ;;  %v1823_v60 = vadd.f32 %v1822_v58, %v1821_v56 }
 0x16c   : > { %v1792_v62 = vrot.slane %v1791_v59, 4  ;;  %v1825_v63 = vadd.f32 %v1824_v61, %v1823_v60 }
 0x16e   : > { %v1793_v34 = vadd.f32 %v1792_v62, %v1791_v59  ;;  %v1826_v0 = vrot.slane %v1825_v63, 4  ;;  %v1861_v28 = vld [vmem:[%s2996_s4] sm:$0xff] (!%p2112_p9)  ;;  %v1862_v29 = vld [vmem:[%s2996_s4 + $0x8] sm:$0xff] (!%p2112_p9)  ;;  %v1863_v30 = vld [vmem:[%s2996_s4 + $0x10] sm:$0xff] (!%p2112_p9) }
 0x16f   : > { %v1864_v31 = vld [vmem:[%s2996_s4 + $0x18] sm:$0xff] (!%p2112_p9)  ;;  %v1865_v32 = vld [vmem:[%s2996_s4 + $0x20] sm:$0xff] (!%p2112_p9)  ;;  %v1866_v36 = vld [vmem:[%s2996_s4 + $0x28] sm:$0xff] (!%p2112_p9) }
 0x170   : > { %v1794_v1 = vrot.slane %v1793_v34, 2  ;;  %v1827_v2 = vadd.f32 %v1826_v0, %v1825_v63  ;;  %v1867_v37 = vld [vmem:[%s2996_s4 + $0x30] sm:$0xff] (!%p2112_p9)  ;;  %v1868_v38 = vld [vmem:[%s2996_s4 + $0x38] sm:$0xff] (!%p2112_p9)  ;;  %v1869_v39 = vld [vmem:[%s2996_s4 + $0x40] sm:$0xff] (!%p2112_p9) }
 0x171   : > { %v1870_v40 = vld [vmem:[%s2996_s4 + $0x48] sm:$0xff] (!%p2112_p9)  ;;  %v1871_v41 = vld [vmem:[%s2996_s4 + $0x50] sm:$0xff] (!%p2112_p9)  ;;  %v1872_v46 = vld [vmem:[%s2996_s4 + $0x58] sm:$0xff] (!%p2112_p9) }
 0x172   : > { %v1795_v3 = vadd.f32 %v1794_v1, %v1793_v34  ;;  %v1828_v4 = vrot.slane %v1827_v2, 2  ;;  %v1873_v47 = vld [vmem:[%s2996_s4 + $0x60] sm:$0xff] (!%p2112_p9)  ;;  %v1874_v48 = vld [vmem:[%s2996_s4 + $0x68] sm:$0xff] (!%p2112_p9) }
 0x174   : > { %v1796_v5 = vrot.slane %v1795_v3, 1  ;;  %v1829_v6 = vadd.f32 %v1828_v4, %v1827_v2 }
 0x176   : > { %v1797_v8 = vadd.f32 %v1796_v5, %v1795_v3  ;;  %v1830_v9 = vrot.slane %v1829_v6, 1  ;;  %1847 = sbr.rel (%p2112_p9) target bundleno = 426 (0x1aa), region = 82 }
 0x178   : > { %v1798_v11 = vadd.f32 %v1797_v8, %v1775_v7  ;;  %v1831_v12 = vadd.f32 %v1830_v9, %v1829_v6  ;;  %v1875_v8 = vld [vmem:[%s2996_s4 + $0x70] sm:$0xff] (!%p2112_p9)  ;;  %v1876_v9 = vld [vmem:[%s2996_s4 + $0x78] sm:$0xff] (!%p2112_p9) }
 0x17a   : > { %1800 = vst.msk [vmem:[#allocation3] sm:$0x1] %vm1799_vm6, %v1798_v11  ;;  %v1832_v13 = vadd.f32 %v1831_v12, %v1802_v10 }
 0x17c   : > { %1833 = vst.msk [vmem:[#allocation3 + $0x1] sm:$0x1] %vm1799_vm6, %v1832_v13 }
 0x181   : > { %v1848_v14 = vld [vmem:[#allocation3] sm:$0x1] }
 0x182   : > { %v1849_v16 = vmul.f32 0.0078125, %v1848_v14 }
 0x183   : > { %v1850_v15 = vld [vmem:[#allocation3 + $0x1] sm:$0x1] }
 0x184   : > { %v1851_v17 = vmul.f32 0.0078125, %v1850_v15  ;;  %v1852_v18 = vmul.f32 %v1849_v16, %v1849_v16 }
 0x186   : > { %v1853_v19 = vsub.f32 %v1851_v17, %v1852_v18 }
 0x188   : > { %v1855_v20 = vadd.f32 1e-05, %v1853_v19 }
 0x18a   : > { %2414 = vrsqrt.f32 %v1855_v20 }
 0x194   : > { %v2415_v25 = vpop.eup %2414 }
 0x195   : > { %v1857_v26 = vmul.f32 %v2415_v25, %v1854_v23 }
 0x197   : > { %v1859_v33 = vmul.f32 %v1857_v26, %v1849_v16  ;;  %v1881_v35 = vrot.slane %v1857_v26, %v1880_v24 }
 0x199   : > { %v1860_v42 = vsub.f32 %v1858_v27, %v1859_v33  ;;  %v1883_v43 = vmul.f32 %v1881_v35, %v1861_v28  ;;  %v1884_v44 = vmul.f32 %v1881_v35, %v1862_v29  ;;  %v1885_v45 = vmul.f32 %v1881_v35, %v1863_v30 }
 0x19a   : > { %v1886_v49 = vmul.f32 %v1881_v35, %v1864_v31  ;;  %v1887_v50 = vmul.f32 %v1881_v35, %v1865_v32  ;;  %v1888_v51 = vmul.f32 %v1881_v35, %v1866_v36  ;;  %v1889_v52 = vmul.f32 %v1881_v35, %v1867_v37 }
 0x19b   : > { %v1903_v53 = vrot.slane %v1860_v42, %v1880_v24  ;;  %v1890_v54 = vmul.f32 %v1881_v35, %v1868_v38  ;;  %v1891_v55 = vmul.f32 %v1881_v35, %v1869_v39  ;;  %v1892_v56 = vmul.f32 %v1881_v35, %v1870_v40 }
 0x19c   : > { %v1893_v57 = vmul.f32 %v1881_v35, %v1871_v41  ;;  %v1894_v58 = vmul.f32 %v1881_v35, %v1872_v46  ;;  %v1895_v59 = vmul.f32 %v1881_v35, %v1873_v47  ;;  %v1896_v60 = vmul.f32 %v1881_v35, %v1874_v48 }
 0x19d   : > { %v1905_v61 = vadd.f32 %v1903_v53, %v1883_v43  ;;  %v1906_v62 = vadd.f32 %v1903_v53, %v1884_v44  ;;  %v1907_v63 = vadd.f32 %v1903_v53, %v1885_v45  ;;  %v1908_v34 = vadd.f32 %v1903_v53, %v1886_v49 }
 0x19e   : > { %v1909_v0 = vadd.f32 %v1903_v53, %v1887_v50  ;;  %v1910_v1 = vadd.f32 %v1903_v53, %v1888_v51  ;;  %v1911_v2 = vadd.f32 %v1903_v53, %v1889_v52  ;;  %v1912_v3 = vadd.f32 %v1903_v53, %v1890_v54 }
 0x19f   : > { %v1921_v4 = vmax.f32 %v1905_v61, 0.0  ;;  %v1922_v5 = vmax.f32 %v1906_v62, 0.0  ;;  %v1923_v6 = vmax.f32 %v1907_v63, 0.0  ;;  %v1924_v7 = vmax.f32 %v1908_v34, 0.0 }
 0x1a0   : > { %v1925_v10 = vmax.f32 %v1909_v0, 0.0  ;;  %v1926_v11 = vmax.f32 %v1910_v1, 0.0  ;;  %v1927_v12 = vmax.f32 %v1911_v2, 0.0  ;;  %v1928_v13 = vmax.f32 %v1912_v3, 0.0 }
 0x1a1   : > { %1937 = vst.msk [vmem:[%s2996_s4] sm:$0xff] %vm1776_vm5, %v1921_v4  ;;  %1938 = vst.msk [vmem:[%s2996_s4 + $0x8] sm:$0xff] %vm1776_vm5, %v1922_v5  ;;  %v1913_v14 = vadd.f32 %v1903_v53, %v1891_v55  ;;  %v1914_v15 = vadd.f32 %v1903_v53, %v1892_v56  ;;  %v1915_v16 = vadd.f32 %v1903_v53, %v1893_v57 }
 0x1a2   : > { %1939 = vst.msk [vmem:[%s2996_s4 + $0x10] sm:$0xff] %vm1776_vm5, %v1923_v6  ;;  %1940 = vst.msk [vmem:[%s2996_s4 + $0x18] sm:$0xff] %vm1776_vm5, %v1924_v7  ;;  %v1916_v17 = vadd.f32 %v1903_v53, %v1894_v58  ;;  %v1917_v18 = vadd.f32 %v1903_v53, %v1895_v59  ;;  %v1918_v19 = vadd.f32 %v1903_v53, %v1896_v60 }
 0x1a3   : > { %1941 = vst.msk [vmem:[%s2996_s4 + $0x20] sm:$0xff] %vm1776_vm5, %v1925_v10  ;;  %1942 = vst.msk [vmem:[%s2996_s4 + $0x28] sm:$0xff] %vm1776_vm5, %v1926_v11  ;;  %v1897_v20 = vmul.f32 %v1881_v35, %v1875_v8  ;;  %v1898_v21 = vmul.f32 %v1881_v35, %v1876_v9  ;;  %v1929_v22 = vmax.f32 %v1913_v14, 0.0  ;;  %v1930_v23 = vmax.f32 %v1914_v15, 0.0 }
 0x1a4   : > { %1943 = vst.msk [vmem:[%s2996_s4 + $0x30] sm:$0xff] %vm1776_vm5, %v1927_v12  ;;  %1944 = vst.msk [vmem:[%s2996_s4 + $0x38] sm:$0xff] %vm1776_vm5, %v1928_v13  ;;  %v1931_v24 = vmax.f32 %v1915_v16, 0.0  ;;  %v1932_v25 = vmax.f32 %v1916_v17, 0.0  ;;  %v1933_v26 = vmax.f32 %v1917_v18, 0.0  ;;  %v1934_v27 = vmax.f32 %v1918_v19, 0.0 }
 0x1a5   : > { %v1919_v28 = vadd.f32 %v1903_v53, %v1897_v20  ;;  %v1920_v29 = vadd.f32 %v1903_v53, %v1898_v21  ;;  %1945 = vst.msk [vmem:[%s2996_s4 + $0x40] sm:$0xff] %vm1776_vm5, %v1929_v22  ;;  %1946 = vst.msk [vmem:[%s2996_s4 + $0x48] sm:$0xff] %vm1776_vm5, %v1930_v23 }
 0x1a6   : > { %1947 = vst.msk [vmem:[%s2996_s4 + $0x50] sm:$0xff] %vm1776_vm5, %v1931_v24  ;;  %1948 = vst.msk [vmem:[%s2996_s4 + $0x58] sm:$0xff] %vm1776_vm5, %v1932_v25 }
 0x1a7   : > { %1949 = vst.msk [vmem:[%s2996_s4 + $0x60] sm:$0xff] %vm1776_vm5, %v1933_v26  ;;  %1950 = vst.msk [vmem:[%s2996_s4 + $0x68] sm:$0xff] %vm1776_vm5, %v1934_v27  ;;  %v1935_v30 = vmax.f32 %v1919_v28, 0.0  ;;  %v1936_v31 = vmax.f32 %v1920_v29, 0.0 }
 0x1a9   : > { %1951 = vst.msk [vmem:[%s2996_s4 + $0x70] sm:$0xff] %vm1776_vm5, %v1935_v30  ;;  %1952 = vst.msk [vmem:[%s2996_s4 + $0x78] sm:$0xff] %vm1776_vm5, %v1936_v31 }
 0x1aa PF: > { %p11_p10 = scmp.ge.s32.totalorder %s2485_s19, 4   ;;  %s2997_s15 = smov %s2434_s16 }
 0x1ab   : > { %s2998_s16 = smov %s2494_s22  ;;  %s2999_s17 = smov %s2485_s19 }
 0x1ac   :  { %13 = sbr.rel (!%p11_p10) target bundleno = 2 (0x2), region = 128 }

</bundles_post_ra>
